<compile_context>
chip_gen: v5e
topology: v5e:2x2
jax: 0.10.0
libtpu: 0.0.40
codegen_flags: <defaults>
</compile_context>

<pallas_src>
import jax
import jax.numpy as jnp
from jax.experimental import pallas as pl
from jax.experimental.pallas import tpu as pltpu


def _vmem_limit(byte_count):
    """Scoped-VMEM request sized from the real tile footprint (2x margin)."""
    floor = 16 * 1024 * 1024          # safe on every generation
    ceil = 96 * 1024 * 1024
    return int(max(floor, min(ceil, 2 * byte_count)))


# --------------------------------------------------------------------------- #
# Kernel A: hoisted layer-0 input projection  X @ Wih0 + b0  (row-tiled matmul)
# --------------------------------------------------------------------------- #
def input_proj_kernel(x_ref, w_ref, b_ref, out_ref):
    acc = jnp.dot(x_ref[...], w_ref[...], preferred_element_type=jnp.float32)
    out_ref[...] = (acc + b_ref[...]).astype(out_ref.dtype)   # bf16 writeback


# --------------------------------------------------------------------------- #
# Kernel B: sequential 2-layer LSTM recurrence + final FC
# --------------------------------------------------------------------------- #
def lstm_recurrent_kernel(maxlen_ref,                      # SMEM scalar prefetch (1,)
                          xp_ref,                          # (steps*B, 4H) bf16 streamed
                          len_ref,                         # (B, 1) i32 resident
                          whh0_ref,                        # (H, 4H) bf16
                          wih1_ref,                        # (H, 4H) bf16
                          whh1_ref,                        # (H, 4H) bf16
                          b1_ref,                          # (1, 4H) f32
                          fcw_ref,                         # (2H, OUTP) bf16
                          fcb_ref,                         # (1, OUTP) f32
                          out_ref,                         # (B, OUTP) f32
                          h_st, c_st):                     # (B, 2H) f32 [l0 | l1]
    B = h_st.shape[0]
    H = h_st.shape[1] // 2
    steps_per_block = xp_ref.shape[0] // B
    pid = pl.program_id(0)
    maxlen = maxlen_ref[0]

    @pl.when(pid == 0)
    def _init():
        h_st[...] = jnp.zeros_like(h_st)
        c_st[...] = jnp.zeros_like(c_st)

    # Hoist resident loads out of the unrolled timestep loop.
    whh0 = whh0_ref[...]
    wih1 = wih1_ref[...]
    whh1 = whh1_ref[...]
    b1 = b1_ref[...]
    lens = len_ref[...]

    def gates_to_hc(g, c_prev):
        # PyTorch gate order: i, f, g, o.  H multiple of 128 -> lane-aligned slices.
        i = jax.nn.sigmoid(g[:, 0 * H:1 * H])
        f = jax.nn.sigmoid(g[:, 1 * H:2 * H])
        gg = jnp.tanh(g[:, 2 * H:3 * H])
        o = jax.nn.sigmoid(g[:, 3 * H:4 * H])
        c_new = f * c_prev + i * gg
        h_new = o * jnp.tanh(c_new)
        return h_new, c_new

    # One chunk-level guard (instead of 8 per-step scf.if regions); the per-row
    # length mask below handles mid-chunk boundaries.
    @pl.when(pid * steps_per_block < maxlen)
    def _chunk():
        for j in range(steps_per_block):                   # fully unrolled
            t = pid * steps_per_block + j
            mask = lens > t                                # pack_padded_sequence emu
            h0_prev = h_st[:, :H]
            h1_prev = h_st[:, H:]
            c0_prev = c_st[:, :H]
            c1_prev = c_st[:, H:]
            # Off-critical-path half of layer 1 (needs only h1(t-1)) issued first.
            g1_part = jnp.dot(h1_prev.astype(jnp.bfloat16), whh1,
                              preferred_element_type=jnp.float32) + b1
            # Layer 0: only h0 @ Whh0 remains on the recurrent critical path.
            xp_t = xp_ref[j * B:(j + 1) * B, :].astype(jnp.float32)
            g0 = xp_t + jnp.dot(h0_prev.astype(jnp.bfloat16), whh0,
                                preferred_element_type=jnp.float32)
            h0n, c0n = gates_to_hc(g0, c0_prev)
            # Layer 1 critical-path half.
            g1 = g1_part + jnp.dot(h0n.astype(jnp.bfloat16), wih1,
                                   preferred_element_type=jnp.float32)
            h1n, c1n = gates_to_hc(g1, c1_prev)
            # Freeze states at t >= len[b] so h_n matches the packed-LSTM result.
            h_st[:, :H] = jnp.where(mask, h0n, h0_prev)
            h_st[:, H:] = jnp.where(mask, h1n, h1_prev)
            c_st[:, :H] = jnp.where(mask, c0n, c0_prev)
            c_st[:, H:] = jnp.where(mask, c1n, c1_prev)

    # Output block has a constant index -> stays resident; written only here.
    @pl.when(pid == pl.num_programs(0) - 1)
    def _final():
        # h_n.transpose(0,1).view(B, n_layers*H) == [h_layer0 | h_layer1]: the
        # contiguous scratch layout makes this a plain read (no concat).
        hfin = h_st[...].astype(jnp.bfloat16)
        out_ref[...] = (
            jnp.dot(hfin, fcw_ref[...], preferred_element_type=jnp.float32)
            + fcb_ref[...])


# --------------------------------------------------------------------------- #
# Wrapper
# --------------------------------------------------------------------------- #
def prepare_params(params):
    """One-time weight prep: transposes, bias sums, bf16 casts, lane-dense
    (128-padded) FC weights.  Do NOT redo this per forward call."""
    H = params["whh0"].shape[1]
    OUT = params["fc_w"].shape[0]
    OUTP = ((OUT + 127) // 128) * 128
    prep = {
        "emb": params["embedding"].astype(jnp.bfloat16),
        "wih0": params["wih0"].T.astype(jnp.bfloat16),                    # (E, 4H)
        "b0": (params["bih0"] + params["bhh0"]).reshape(1, 4 * H).astype(jnp.float32),
        "whh0": params["whh0"].T.astype(jnp.bfloat16),                    # (H, 4H)
        "wih1": params["wih1"].T.astype(jnp.bfloat16),                    # (H, 4H)
        "whh1": params["whh1"].T.astype(jnp.bfloat16),                    # (H, 4H)
        "b1": (params["bih1"] + params["bhh1"]).reshape(1, 4 * H).astype(jnp.float32),
        "fcw": jnp.zeros((2 * H, OUTP), jnp.float32)
                 .at[:, :OUT].set(params["fc_w"].T).astype(jnp.bfloat16), # (2H, OUTP)
        "fcb": jnp.zeros((1, OUTP), jnp.float32)
                 .at[:, :OUT].set(params["fc_b"].reshape(1, OUT)),
    }
    meta = {"hidden": H, "out_dim": OUT, "out_pad": OUTP,
            "embed_dim": params["embedding"].shape[1]}
    return prep, meta


def classifier_forward(text, text_len, prep, meta):
    """text: (T, B) int32 (time-major), text_len: (B,) int32."""
    T, B = text.shape
    E = meta["embed_dim"]
    H = meta["hidden"]
    G = 4 * H
    OUT = meta["out_dim"]
    OUTP = meta["out_pad"]
    assert B % 8 == 0 and H % 128 == 0 and E % 128 == 0, "pad B/H/E for TPU tiling"

    # --- chunking: pad T instead of divisor-chunking so awkward/prime T keeps the
    # 8-step unroll and large Kernel-A tiles.
    steps_b = 8                                             # timesteps per chunk
    target_a = max(1, (512 // B) // steps_b) * steps_b      # ~512-row Kernel A tiles
    steps_a = max(steps_b, min(target_a, pl.cdiv(T, steps_b) * steps_b))
    T_pad = pl.cdiv(T, steps_a) * steps_a                   # multiple of both chunks

    # Glue: pad time (token 0; masked out by lengths), bf16 embedding gather,
    # flattened time*batch for the fat input matmul.
    text_p = jnp.pad(text, ((0, T_pad - T), (0, 0)))
    embedded = jnp.take(prep["emb"], text_p, axis=0).reshape(T_pad * B, E)  # bf16
    lens = text_len.astype(jnp.int32).reshape(B, 1)
    maxlen = jnp.max(text_len).astype(jnp.int32).reshape(1)

    # ---- Kernel A: hoisted layer-0 input projection (parallel over row tiles) ----
    rows_a = steps_a * B
    vmem_a = _vmem_limit(2 * (rows_a * E * 2 + rows_a * G * 2 + E * G * 2 + G * 4))
    x_proj = pl.pallas_call(
        input_proj_kernel,
        out_shape=jax.ShapeDtypeStruct((T_pad * B, G), jnp.bfloat16),      # bf16 HBM
        grid=(T_pad // steps_a,),
        in_specs=[pl.BlockSpec((rows_a, E), lambda i: (i, 0)),
                  pl.BlockSpec((E, G), lambda i: (0, 0)),
                  pl.BlockSpec((1, G), lambda i: (0, 0))],
        out_specs=pl.BlockSpec((rows_a, G), lambda i: (i, 0)),
        compiler_params=pltpu.CompilerParams(
            dimension_semantics=("parallel",),
            vmem_limit_bytes=vmem_a),
    )(embedded, prep["wih0"], prep["b0"])

    # ---- Kernel B: sequential recurrence, streaming x_proj one chunk at a time ----
    rows_b = steps_b * B
    n_chunks = T_pad // steps_b

    def xp_index_map(i, ml):
        # Chunks entirely past max(text_len) reuse the previous block index, so the
        # pipeline elides their HBM->VMEM copies (pl.when already skips the compute).
        last = jnp.maximum((ml[0] + steps_b - 1) // steps_b - 1, 0)
        return (jnp.minimum(i, last), 0)

    vmem_b = _vmem_limit(
        2 * (rows_b * G * 2 + B * 4 + 3 * H * G * 2 + G * 4
             + 2 * H * OUTP * 2 + OUTP * 4 + B * OUTP * 4)
        + 2 * (B * 2 * H * 4))
    grid_spec = pltpu.PrefetchScalarGridSpec(
        num_scalar_prefetch=1,                # max sequence length -> early skip
        grid=(n_chunks,),
        in_specs=[
            pl.BlockSpec((rows_b, G), xp_index_map),               # streamed x_proj
            pl.BlockSpec((B, 1), lambda i, ml: (0, 0)),            # lengths (resident)
            pl.BlockSpec((H, G), lambda i, ml: (0, 0)),            # Whh0
            pl.BlockSpec((H, G), lambda i, ml: (0, 0)),            # Wih1
            pl.BlockSpec((H, G), lambda i, ml: (0, 0)),            # Whh1
            pl.BlockSpec((1, G), lambda i, ml: (0, 0)),            # b1
            pl.BlockSpec((2 * H, OUTP), lambda i, ml: (0, 0)),     # FC weight (padded)
            pl.BlockSpec((1, OUTP), lambda i, ml: (0, 0)),         # FC bias (padded)
        ],
        out_specs=pl.BlockSpec((B, OUTP), lambda i, ml: (0, 0)),
        scratch_shapes=[pltpu.VMEM((B, 2 * H), jnp.float32),       # h = [h0 | h1]
                        pltpu.VMEM((B, 2 * H), jnp.float32)],      # c = [c0 | c1]
    )
    logits_p = pl.pallas_call(
        lstm_recurrent_kernel,
        out_shape=jax.ShapeDtypeStruct((B, OUTP), jnp.float32),
        grid_spec=grid_spec,
        compiler_params=pltpu.CompilerParams(
            dimension_semantics=("arbitrary",),                    # state carried in time
            vmem_limit_bytes=vmem_b),
    )(maxlen, x_proj, lens, prep["whh0"], prep["wih1"], prep["whh1"], prep["b1"],
      prep["fcw"], prep["fcb"])

    return logits_p[:, :OUT]


# --------------------------------------------------------------------------- #
# Pure-JAX f32 reference (for validation) and parameter init
# --------------------------------------------------------------------------- #
def reference_forward(params, text, text_len):
    T, B = text.shape
    H = params["whh0"].shape[1]
    emb = params["embedding"][text]                               # (T, B, E) f32

    def cell(x, h, c, wih, whh, bih, bhh):
        g = x @ wih.T + h @ whh.T + bih + bhh
        i, f, gg, o = jnp.split(g, 4, axis=-1)
        c = jax.nn.sigmoid(f) * c + jax.nn.sigmoid(i) * jnp.tanh(gg)
        h = jax.nn.sigmoid(o) * jnp.tanh(c)
        return h, c

    h0 = c0 = h1 = c1 = jnp.zeros((B, H), jnp.float32)
    for t in range(T):
        m = (text_len > t)[:, None]
        h0n, c0n = cell(emb[t], h0, c0, params["wih0"], params["whh0"],
                        params["bih0"], params["bhh0"])
        h1n, c1n = cell(h0n, h1, c1, params["wih1"], params["whh1"],
                        params["bih1"], params["bhh1"])
        h0 = jnp.where(m, h0n, h0); c0 = jnp.where(m, c0n, c0)
        h1 = jnp.where(m, h1n, h1); c1 = jnp.where(m, c1n, c1)
    hcat = jnp.concatenate([h0, h1], axis=-1)
    return hcat @ params["fc_w"].T + params["fc_b"]


def init_params(key, vocab_size, output_dim, embedding_dim, hidden_dim):
    keys = jax.random.split(key, 12)
    s = 1.0 / jnp.sqrt(hidden_dim)
    u = lambda k, shape: jax.random.uniform(k, shape, jnp.float32, -s, s)
    return {
        "embedding": jax.random.normal(keys[0], (vocab_size, embedding_dim), jnp.float32),
        "wih0": u(keys[1], (4 * hidden_dim, embedding_dim)),
        "whh0": u(keys[2], (4 * hidden_dim, hidden_dim)),
        "bih0": u(keys[3], (4 * hidden_dim,)),
        "bhh0": u(keys[4], (4 * hidden_dim,)),
        "wih1": u(keys[5], (4 * hidden_dim, hidden_dim)),
        "whh1": u(keys[6], (4 * hidden_dim, hidden_dim)),
        "bih1": u(keys[7], (4 * hidden_dim,)),
        "bhh1": u(keys[8], (4 * hidden_dim,)),
        "fc_w": u(keys[9], (output_dim, 2 * hidden_dim)),
        "fc_b": u(keys[10], (output_dim,)),
    }


if __name__ == "__main__":
    VOCAB, OUT, E, H = 64, 8, 128, 128
    T, B = 8, 8

    key = jax.random.PRNGKey(0)
    pkey, tkey = jax.random.split(key)
    params = init_params(pkey, VOCAB, OUT, E, H)
    prep, meta = prepare_params(params)           # one-time weight prep

    text = jax.random.randint(tkey, (T, B), 0, VOCAB, dtype=jnp.int32)
    # pack_padded_sequence requires lengths sorted descending
    text_len = jnp.array([8, 8, 7, 6, 5, 4, 3, 2], dtype=jnp.int32)

    logits = classifier_forward(text, text_len, prep, meta)
    jax.block_until_ready(logits)
    assert logits.shape == (B, OUT)

    # Loose-tolerance check vs the f32 reference (bf16 weights/activations drift).
    ref = reference_forward(params, text, text_len)
    err = float(jnp.max(jnp.abs(logits - ref)))
    assert err < 1e-1, f"max abs diff vs f32 reference too large: {err}"
    print("KERNEL_OK")
</pallas_src>

<mosaic_0001>
module attributes {stable_mosaic.version = 11 : i64} {
  func.func @input_proj_kernel(%arg0: i32, %arg1: memref<64x128xbf16, #tpu.memory_space<vmem>>, %arg2: memref<128x512xbf16, #tpu.memory_space<vmem>>, %arg3: memref<1x512xf32, #tpu.memory_space<vmem>>, %arg4: memref<64x512xbf16, #tpu.memory_space<vmem>>) attributes {dimension_semantics = [#tpu.dimension_semantics<parallel>], iteration_bounds = array<i64: 1>, scalar_prefetch = 0 : i64, scratch_operands = 0 : i64, tpu.core_type = #tpu.core_type<tc>, window_params = [{transform_indices = @transform_0, window_bounds = array<i64: 64, 128>}, {pipeline_mode = #tpu.pipeline_mode<synchronous>, transform_indices = @transform_1, window_bounds = array<i64: 128, 512>}, {pipeline_mode = #tpu.pipeline_mode<synchronous>, transform_indices = @transform_2, window_bounds = array<i64: 1, 512>}, {transform_indices = @transform_3, window_bounds = array<i64: 64, 512>}]} {
    %c0 = arith.constant 0 : index
    %c0_0 = arith.constant 0 : index
    %0 = vector.load %arg1[%c0, %c0_0] : memref<64x128xbf16, #tpu.memory_space<vmem>>, vector<64x128xbf16>
    %c0_1 = arith.constant 0 : index
    %c0_2 = arith.constant 0 : index
    %1 = vector.load %arg2[%c0_1, %c0_2] : memref<128x512xbf16, #tpu.memory_space<vmem>>, vector<128x512xbf16>
    %cst = arith.constant dense<0.000000e+00> : vector<64x512xf32>
    %2 = tpu.matmul %0, %1, %cst {dimension_numbers = #tpu.dot_dimension_numbers<[1], [0], [0], [1], [0, 0, 1, 1], [], []>} : vector<64x128xbf16>, vector<128x512xbf16>, vector<64x512xf32> -> vector<64x512xf32>
    %c0_3 = arith.constant 0 : index
    %c0_4 = arith.constant 0 : index
    %3 = vector.load %arg3[%c0_3, %c0_4] : memref<1x512xf32, #tpu.memory_space<vmem>>, vector<1x512xf32>
    %4 = vector.broadcast %3 : vector<1x512xf32> to vector<64x512xf32>
    %5 = arith.addf %2, %4 : vector<64x512xf32>
    %6 = arith.truncf %5 : vector<64x512xf32> to vector<64x512xbf16>
    %c0_5 = arith.constant 0 : index
    %c0_6 = arith.constant 0 : index
    %7 = vector.load %arg4[%c0_5, %c0_6] : memref<64x512xbf16, #tpu.memory_space<vmem>>, vector<64x512xbf16>
    tpu.vector_store %arg4[%c0_5, %c0_6], %6 {strides = array<i32>} : memref<64x512xbf16, #tpu.memory_space<vmem>>, vector<64x512xbf16>,
    return
  }
  func.func @transform_0(%arg0: i32) -> (i32, i32) {
    %c0_i32 = arith.constant 0 : i32
    %c0_i32_0 = arith.constant 0 : i32
    return %arg0, %c0_i32 : i32, i32
  }
  func.func @transform_1(%arg0: i32) -> (i32, i32) {
    %c0_i32 = arith.constant 0 : i32
    %c0_i32_0 = arith.constant 0 : i32
    %c0_i32_1 = arith.constant 0 : i32
    return %c0_i32, %c0_i32_0 : i32, i32
  }
  func.func @transform_2(%arg0: i32) -> (i32, i32) {
    %c0_i32 = arith.constant 0 : i32
    %c0_i32_0 = arith.constant 0 : i32
    %c0_i32_1 = arith.constant 0 : i32
    return %c0_i32, %c0_i32_0 : i32, i32
  }
  func.func @transform_3(%arg0: i32) -> (i32, i32) {
    %c0_i32 = arith.constant 0 : i32
    %c0_i32_0 = arith.constant 0 : i32
    return %arg0, %c0_i32 : i32, i32
  }
}

</mosaic_0001>

<bundles_post_ra>
// kernel: tpu_custom_call.1
= control target key start
LH: loop header
LB: loop body
LE: loop exit
PB: predicated region body
PF: predicated region fallthrough
CT: control target
= control target key end

     0   :  { %8 = vsyncpa [#allocation3], 0  ;;  %s838_s0 = inlined_call_operand.hbm [shape: bf16[64,128], index: 0, kind: input, shape index: {}]   ;;  %s839_s1 = inlined_call_operand.hbm [shape: bf16[128,512], index: 1, kind: input, shape index: {}]   ;;  %s840_s2 = inlined_call_operand.hbm [shape: f32[1,512], index: 2, kind: input, shape index: {}]   ;;  %s841_s3 = inlined_call_operand.hbm [shape: bf16[64,512], index: 3, kind: output, shape index: {}]  }
   0x1   :  { %9 = vsyncpa [#allocation6], 0  ;;  %s28_s14 = sshll.u32 %s839_s1, 4  ;;  %s29_s14 = int_to_ptr.hbm [resolvable:$true] %s28_s14 }
   0x2   :  { %10 = vsyncpa [#allocation4], 0  ;;  %s752_s15 = smov [#allocation5]   ;;  %s15_s19 = sshll.u32 %s838_s0, 4  ;;  %s16_s19 = int_to_ptr.hbm [resolvable:$true] %s15_s19 }
   0x3   :  { %s30_s16 = sshll.u32 %s752_s15, 4  ;;  %s753_s20 = smov 256   ;;  %s31_s16 = int_to_ptr.vmem [resolvable:$true] %s30_s16 }
   0x4   :  { %s754_s21 = smov 16   ;;  %s755_s22 = smov [#allocation2]  }
   0x5   :  { %36 = dma.hbm_to_vmem [thread:$0]  %s29_s14, 4096, %s31_s16, [#allocation6], %s753_s20, %s753_s20, %s754_s21  }
   0x6   :  { %s17_s23 = sshll.u32 %s755_s22, 4  ;;  %s756_s1 = smov 64   ;;  %s18_s23 = int_to_ptr.vmem [resolvable:$true] %s17_s23 }
   0x7   :  { %s757_s24 = smov 4   ;;  %s42_s27 = sshll.u32 %s840_s2, 4  ;;  %s43_s27 = int_to_ptr.hbm [resolvable:$true] %s42_s27 }
   0x8   :  { %23 = dma.hbm_to_vmem [thread:$0]  %s16_s19, 512, %s18_s23, [#allocation3], %s756_s1, %s756_s1, %s757_s24  }
   0x9   :  { %s758_s28 = smov [#allocation7]  }
   0xa   :  { %s44_s0 = sshll.u32 %s758_s28, 4  ;;  %s45_s0 = int_to_ptr.vmem [resolvable:$true] %s44_s0 }
   0xb   :  { %47 = dma.hbm_to_vmem [thread:$0]  %s43_s27, 64, %s45_s0, [#allocation6]  }
   0xc   :  { %746 = dma.done.wait [#allocation3], 512  }
   0xd   :  { %747 = vsyncadd [#allocation3], 4294966784 }
   0xe   :  { %748 = dma.done.wait [#allocation6], 4160  }
   0xf   :  { %749 = vsyncadd [#allocation6], 4294963136  ;;  %v592_v0 = vld [vmem:[#allocation5 + $0xe0] sm:$0xf]  ;;  %v640_v1 = vld [vmem:[#allocation5 + $0xec] sm:$0xf0] }
  0x10   :  { %v638_v2 = vld [vmem:[#allocation5 + $0xe4] sm:$0xf]  ;;  %v593_v3 = vor.u32 %v640_v1, %v592_v0  ;;  %v594_v4 = vld [vmem:[#allocation5 + $0xf0] sm:$0xf0]  ;;  %v600_v5 = vld [vmem:[#allocation5 + $0xe8] sm:$0xf] }
  0x11   :  { %v641_v6 = vld [vmem:[#allocation5 + $0xf4] sm:$0xf0]  ;;  %v597_v7 = vor.u32 %v638_v2, %v594_v4  ;;  %v639_v9 = vld [vmem:[#allocation5 + $0xec] sm:$0xf]  ;;  %v602_v10 = vld [vmem:[#allocation5 + $0xf8] sm:$0xf0] }
  0x12   :  { %v601_v8 = vor.u32 %v641_v6, %v600_v5  ;;  %v576_v11 = vld [vmem:[#allocation5 + $0xc0] sm:$0xf]  ;;  %294 = vmatpush.bf16.msra.mxu0 %v593_v3  ;;  %v605_v12 = vor.u32 %v639_v9, %v602_v10  ;;  %v636_v13 = vld [vmem:[#allocation5 + $0xcc] sm:$0xf0]  ;;  %v634_v14 = vld [vmem:[#allocation5 + $0xc4] sm:$0xf] }
  0x13   :  { %v578_v15 = vld [vmem:[#allocation5 + $0xd0] sm:$0xf0]  ;;  %323 = vmatpush.bf16.msra.mxu1 %v597_v7  ;;  %v577_v16 = vor.u32 %v636_v13, %v576_v11  ;;  %v584_v18 = vld [vmem:[#allocation5 + $0xc8] sm:$0xf]  ;;  %v637_v19 = vld [vmem:[#allocation5 + $0xd4] sm:$0xf0] }
  0x14   :  { %352 = vmatpush.bf16.msra.mxu2 %v601_v8  ;;  %v581_v17 = vor.u32 %v634_v14, %v578_v15  ;;  %v635_v20 = vld [vmem:[#allocation5 + $0xcc] sm:$0xf]  ;;  %381 = vmatpush.bf16.msra.mxu3 %v605_v12  ;;  %v585_v21 = vor.u32 %v637_v19, %v584_v18  ;;  %v586_v22 = vld [vmem:[#allocation5 + $0xd8] sm:$0xf0]  ;;  %v560_v23 = vld [vmem:[#allocation5 + $0xa0] sm:$0xf] }
  0x15   :  { %v632_v24 = vld [vmem:[#allocation5 + $0xac] sm:$0xf0]  ;;  %v589_v25 = vor.u32 %v635_v20, %v586_v22  ;;  %v630_v26 = vld [vmem:[#allocation5 + $0xa4] sm:$0xf]  ;;  %v562_v27 = vld [vmem:[#allocation5 + $0xb0] sm:$0xf0] }
  0x16   :  { %v568_v28 = vld [vmem:[#allocation5 + $0xa8] sm:$0xf]  ;;  %295 = vmatpush.bf16.msra.mxu0 %v577_v16  ;;  %v561_v29 = vor.u32 %v632_v24, %v560_v23  ;;  %v633_v30 = vld [vmem:[#allocation5 + $0xb4] sm:$0xf0]  ;;  %v631_v31 = vld [vmem:[#allocation5 + $0xac] sm:$0xf]  ;;  %v565_v33 = vor.u32 %v630_v26, %v562_v27 }
  0x17   :  { %v570_v32 = vld [vmem:[#allocation5 + $0xb8] sm:$0xf0]  ;;  %324 = vmatpush.bf16.msra.mxu1 %v581_v17  ;;  %v569_v34 = vor.u32 %v633_v30, %v568_v28  ;;  %v544_v35 = vld [vmem:[#allocation5 + $0x80] sm:$0xf]  ;;  %v628_v36 = vld [vmem:[#allocation5 + $0x8c] sm:$0xf0] }
  0x18   :  { %353 = vmatpush.bf16.msra.mxu2 %v585_v21  ;;  %v626_v37 = vld [vmem:[#allocation5 + $0x84] sm:$0xf]  ;;  %382 = vmatpush.bf16.msra.mxu3 %v589_v25  ;;  %v573_v38 = vor.u32 %v631_v31, %v570_v32  ;;  %v546_v39 = vld [vmem:[#allocation5 + $0x90] sm:$0xf0]  ;;  %v552_v40 = vld [vmem:[#allocation5 + $0x88] sm:$0xf]  ;;  %v545_v44 = vor.u32 %v628_v36, %v544_v35 }
  0x19   :  { %v629_v41 = vld [vmem:[#allocation5 + $0x94] sm:$0xf0]  ;;  %v627_v42 = vld [vmem:[#allocation5 + $0x8c] sm:$0xf]  ;;  %v554_v43 = vld [vmem:[#allocation5 + $0x98] sm:$0xf0]  ;;  %v549_v45 = vor.u32 %v626_v37, %v546_v39 }
  0x1a   :  { %296 = vmatpush.bf16.msra.mxu0 %v561_v29  ;;  %v553_v46 = vor.u32 %v629_v41, %v552_v40  ;;  %v528_v47 = vld [vmem:[#allocation5 + $0x60] sm:$0xf]  ;;  %v624_v48 = vld [vmem:[#allocation5 + $0x6c] sm:$0xf0]  ;;  %v622_v49 = vld [vmem:[#allocation5 + $0x64] sm:$0xf]  ;;  %v557_v50 = vor.u32 %v627_v42, %v554_v43 }
  0x1b   :  { %325 = vmatpush.bf16.msra.mxu1 %v565_v33  ;;  %v530_v51 = vld [vmem:[#allocation5 + $0x70] sm:$0xf0]  ;;  %v536_v52 = vld [vmem:[#allocation5 + $0x68] sm:$0xf]  ;;  %v625_v53 = vld [vmem:[#allocation5 + $0x74] sm:$0xf0]  ;;  %v529_v56 = vor.u32 %v624_v48, %v528_v47 }
  0x1c   :  { %354 = vmatpush.bf16.msra.mxu2 %v569_v34  ;;  %383 = vmatpush.bf16.msra.mxu3 %v573_v38  ;;  %v623_v54 = vld [vmem:[#allocation5 + $0x6c] sm:$0xf]  ;;  %v538_v55 = vld [vmem:[#allocation5 + $0x78] sm:$0xf0]  ;;  %v533_v57 = vor.u32 %v622_v49, %v530_v51  ;;  %v537_v58 = vor.u32 %v625_v53, %v536_v52  ;;  %v512_v59 = vld [vmem:[#allocation5 + $0x40] sm:$0xf] }
  0x1d   :  { %v620_v60 = vld [vmem:[#allocation5 + $0x4c] sm:$0xf0]  ;;  %v618_v61 = vld [vmem:[#allocation5 + $0x44] sm:$0xf]  ;;  %v541_v62 = vor.u32 %v623_v54, %v538_v55  ;;  %v514_v63 = vld [vmem:[#allocation5 + $0x50] sm:$0xf0] }
  0x1e   :  { %297 = vmatpush.bf16.msra.mxu0 %v545_v44  ;;  %v520_v0 = vld [vmem:[#allocation5 + $0x48] sm:$0xf]  ;;  %v621_v1 = vld [vmem:[#allocation5 + $0x54] sm:$0xf0]  ;;  %v619_v2 = vld [vmem:[#allocation5 + $0x4c] sm:$0xf]  ;;  %v513_v4 = vor.u32 %v620_v60, %v512_v59  ;;  %v517_v5 = vor.u32 %v618_v61, %v514_v63 }
  0x1f   :  { %326 = vmatpush.bf16.msra.mxu1 %v549_v45  ;;  %v522_v3 = vld [vmem:[#allocation5 + $0x58] sm:$0xf0]  ;;  %v521_v6 = vor.u32 %v621_v1, %v520_v0  ;;  %v496_v7 = vld [vmem:[#allocation5 + $0x20] sm:$0xf]  ;;  %v616_v8 = vld [vmem:[#allocation5 + $0x2c] sm:$0xf0] }
  0x20   :  { %355 = vmatpush.bf16.msra.mxu2 %v553_v46  ;;  %384 = vmatpush.bf16.msra.mxu3 %v557_v50  ;;  %v614_v9 = vld [vmem:[#allocation5 + $0x24] sm:$0xf]  ;;  %v525_v10 = vor.u32 %v619_v2, %v522_v3  ;;  %v498_v11 = vld [vmem:[#allocation5 + $0x30] sm:$0xf0]  ;;  %v504_v12 = vld [vmem:[#allocation5 + $0x28] sm:$0xf]  ;;  %v497_v16 = vor.u32 %v616_v8, %v496_v7 }
  0x21   :  { %v617_v13 = vld [vmem:[#allocation5 + $0x34] sm:$0xf0]  ;;  %v615_v14 = vld [vmem:[#allocation5 + $0x2c] sm:$0xf]  ;;  %v506_v15 = vld [vmem:[#allocation5 + $0x38] sm:$0xf0]  ;;  %v501_v17 = vor.u32 %v614_v9, %v498_v11 }
  0x22   :  { %298 = vmatpush.bf16.msra.mxu0 %v529_v56  ;;  %v505_v18 = vor.u32 %v617_v13, %v504_v12  ;;  %v480_v19 = vld [vmem:[#allocation5] sm:$0xf]  ;;  %v612_v20 = vld [vmem:[#allocation5 + $0xc] sm:$0xf0]  ;;  %v610_v21 = vld [vmem:[#allocation5 + $0x4] sm:$0xf]  ;;  %v509_v22 = vor.u32 %v615_v14, %v506_v15 }
  0x23   :  { %327 = vmatpush.bf16.msra.mxu1 %v533_v57  ;;  %v482_v23 = vld [vmem:[#allocation5 + $0x10] sm:$0xf0]  ;;  %v488_v24 = vld [vmem:[#allocation5 + $0x8] sm:$0xf]  ;;  %v613_v25 = vld [vmem:[#allocation5 + $0x14] sm:$0xf0]  ;;  %v481_v28 = vor.u32 %v612_v20, %v480_v19 }
  0x24   :  { %356 = vmatpush.bf16.msra.mxu2 %v537_v58  ;;  %385 = vmatpush.bf16.msra.mxu3 %v541_v62  ;;  %v611_v26 = vld [vmem:[#allocation5 + $0xc] sm:$0xf]  ;;  %v490_v27 = vld [vmem:[#allocation5 + $0x18] sm:$0xf0]  ;;  %v485_v29 = vor.u32 %v610_v21, %v482_v23  ;;  %v489_v30 = vor.u32 %v613_v25, %v488_v24  ;;  %v606_v32 = vld [vmem:[#allocation2] sm:$0xff]  ;;  %s759_s2 = smov [#allocation8]  }
  0x25   :  { %v493_v31 = vor.u32 %v611_v26, %v490_v27  ;;  %v607_v33 = vld [vmem:[#allocation2 + $0x8] sm:$0xff]  ;;  %v608_v34 = vld [vmem:[#allocation2 + $0x10] sm:$0xff]  ;;  %v609_v35 = vld [vmem:[#allocation2 + $0x18] sm:$0xff]  ;;  %s446_s29 = sshll.u32 %s759_s2, 4  ;;  %s448_s5 = sshll.u32 %s841_s3, 4  ;;  %s447_s29 = int_to_ptr.vmem [resolvable:$true] %s446_s29  ;;  %s449_s5 = int_to_ptr.hbm [resolvable:$true] %s448_s5 }
  0x26   :  { %299 = vmatpush.bf16.msra.mxu0 %v513_v4  ;;  %v100_v36 = vld [vmem:[#allocation7] sm:$0xf] }
  0x27   :  { %328 = vmatpush.bf16.msra.mxu1 %v517_v5  ;;  %v792_v37 = vperm.slane %v100_v36, 0  ;;  %v794_v38 = vperm.slane %v100_v36, 1  ;;  %v798_v44 = vperm.slane %v100_v36, 2  ;;  %v800_v45 = vperm.slane %v100_v36, 3 }
  0x28   :  { %357 = vmatpush.bf16.msra.mxu2 %v521_v6  ;;  %386 = vmatpush.bf16.msra.mxu3 %v525_v10 }
  0x2a   :  { %300 = vmatpush.bf16.msra.mxu0 %v497_v16 }
  0x2b   :  { %329 = vmatpush.bf16.msra.mxu1 %v501_v17 }
  0x2c   :  { %358 = vmatpush.bf16.msra.mxu2 %v505_v18  ;;  %387 = vmatpush.bf16.msra.mxu3 %v509_v22 }
  0x2e   :  { %301 = vmatpush.bf16.msra.mxu0 %v481_v28 }
  0x2f   :  { %330 = vmatpush.bf16.msra.mxu1 %v485_v29 }
  0x30   :  { %359 = vmatpush.bf16.msra.mxu2 %v489_v30  ;;  %388 = vmatpush.bf16.msra.mxu3 %v493_v31 }
  0x31   :  { %302 = vmatmul.bf16.vlgmr.msra.gmra.mxu0 %v606_v32 }
  0x32   :  { %331 = vmatmul.bf16.vlgmr.msra.gmra.mxu1 %v606_v32 }
  0x33   :  { %360 = vmatmul.bf16.vlgmr.msra.gmra.mxu2 %v606_v32  ;;  %389 = vmatmul.bf16.vlgmr.msra.gmra.mxu3 %v606_v32 }
  0x41   :  { %307 = vmatmul.bf16.gmra.mxu0 %v607_v33 }
  0x42   :  { %336 = vmatmul.bf16.gmra.mxu1 %v607_v33 }
  0x43   :  { %365 = vmatmul.bf16.gmra.mxu2 %v607_v33  ;;  %394 = vmatmul.bf16.gmra.mxu3 %v607_v33 }
  0x51   :  { %312 = vmatmul.bf16.gmra.mxu0 %v608_v34 }
  0x52   :  { %341 = vmatmul.bf16.gmra.mxu1 %v608_v34 }
  0x53   :  { %370 = vmatmul.bf16.gmra.mxu2 %v608_v34  ;;  %399 = vmatmul.bf16.gmra.mxu3 %v608_v34 }
  0x61   :  { %317 = vmatmul.bf16.gmra.mxu0 %v609_v35 }
  0x62   :  { %346 = vmatmul.bf16.gmra.mxu1 %v609_v35 }
  0x63   :  { %375 = vmatmul.bf16.gmra.mxu2 %v609_v35  ;;  %404 = vmatmul.bf16.gmra.mxu3 %v609_v35 }
  0xae   :  { %v303_v39 = vpop.f32.mrf.mxu0 }
  0xaf   :  { %v304_v40 = vadd.f32 %v303_v39, %v792_v37  ;;  %v332_v41 = vpop.f32.mrf.mxu1 }
  0xb0   :  { %v333_v42 = vadd.f32 %v332_v41, %v794_v38 }
  0xb2   :  { %v410_v43 = vpack.c.bf16 %v333_v42, %v304_v40 }
  0xb4   :  { %426 = vst [vmem:[#allocation8] sm:$0xff] %v410_v43 }
  0xb6   :  { %v361_v46 = vpop.f32.mrf.mxu2  ;;  %v390_v48 = vpop.f32.mrf.mxu3 }
  0xb7   :  { %v362_v47 = vadd.f32 %v361_v46, %v798_v44  ;;  %v305_v49 = vpop.f32.mrf.mxu0  ;;  %v391_v50 = vadd.f32 %v390_v48, %v800_v45  ;;  %v334_v52 = vpop.f32.mrf.mxu1 }
  0xb8   :  { %v306_v51 = vadd.f32 %v305_v49, %v792_v37  ;;  %v335_v53 = vadd.f32 %v334_v52, %v794_v38 }
  0xb9   :  { %v411_v54 = vpack.c.bf16 %v391_v50, %v362_v47 }
  0xba   :  { %v412_v55 = vpack.c.bf16 %v335_v53, %v306_v51 }
  0xbb   :  { %427 = vst [vmem:[#allocation8 + $0x8] sm:$0xff] %v411_v54 }
  0xbc   :  { %428 = vst [vmem:[#allocation8 + $0x10] sm:$0xff] %v412_v55 }
  0xbe   :  { %v363_v56 = vpop.f32.mrf.mxu2  ;;  %v392_v58 = vpop.f32.mrf.mxu3 }
  0xbf   :  { %v364_v57 = vadd.f32 %v363_v56, %v798_v44  ;;  %v308_v59 = vpop.f32.mrf.mxu0  ;;  %v393_v60 = vadd.f32 %v392_v58, %v800_v45  ;;  %v337_v62 = vpop.f32.mrf.mxu1 }
  0xc0   :  { %v309_v61 = vadd.f32 %v308_v59, %v792_v37  ;;  %v338_v63 = vadd.f32 %v337_v62, %v794_v38 }
  0xc1   :  { %v413_v0 = vpack.c.bf16 %v393_v60, %v364_v57 }
  0xc2   :  { %v414_v1 = vpack.c.bf16 %v338_v63, %v309_v61 }
  0xc3   :  { %429 = vst [vmem:[#allocation8 + $0x18] sm:$0xff] %v413_v0 }
  0xc4   :  { %430 = vst [vmem:[#allocation8 + $0x20] sm:$0xff] %v414_v1 }
  0xc6   :  { %v366_v2 = vpop.f32.mrf.mxu2  ;;  %v395_v4 = vpop.f32.mrf.mxu3 }
  0xc7   :  { %v367_v3 = vadd.f32 %v366_v2, %v798_v44  ;;  %v310_v5 = vpop.f32.mrf.mxu0  ;;  %v396_v6 = vadd.f32 %v395_v4, %v800_v45  ;;  %v339_v8 = vpop.f32.mrf.mxu1 }
  0xc8   :  { %v311_v7 = vadd.f32 %v310_v5, %v792_v37  ;;  %v340_v9 = vadd.f32 %v339_v8, %v794_v38 }
  0xc9   :  { %v415_v10 = vpack.c.bf16 %v396_v6, %v367_v3 }
  0xca   :  { %v416_v11 = vpack.c.bf16 %v340_v9, %v311_v7 }
  0xcb   :  { %431 = vst [vmem:[#allocation8 + $0x28] sm:$0xff] %v415_v10 }
  0xcc   :  { %432 = vst [vmem:[#allocation8 + $0x30] sm:$0xff] %v416_v11 }
  0xce   :  { %v368_v12 = vpop.f32.mrf.mxu2  ;;  %v397_v14 = vpop.f32.mrf.mxu3 }
  0xcf   :  { %v369_v13 = vadd.f32 %v368_v12, %v798_v44  ;;  %v313_v15 = vpop.f32.mrf.mxu0  ;;  %v398_v16 = vadd.f32 %v397_v14, %v800_v45  ;;  %v342_v18 = vpop.f32.mrf.mxu1 }
  0xd0   :  { %v314_v17 = vadd.f32 %v313_v15, %v792_v37  ;;  %v343_v19 = vadd.f32 %v342_v18, %v794_v38 }
  0xd1   :  { %v417_v20 = vpack.c.bf16 %v398_v16, %v369_v13 }
  0xd2   :  { %v418_v21 = vpack.c.bf16 %v343_v19, %v314_v17 }
  0xd3   :  { %433 = vst [vmem:[#allocation8 + $0x38] sm:$0xff] %v417_v20 }
  0xd4   :  { %434 = vst [vmem:[#allocation8 + $0x40] sm:$0xff] %v418_v21 }
  0xd6   :  { %v371_v22 = vpop.f32.mrf.mxu2  ;;  %v400_v24 = vpop.f32.mrf.mxu3 }
  0xd7   :  { %v372_v23 = vadd.f32 %v371_v22, %v798_v44  ;;  %v315_v25 = vpop.f32.mrf.mxu0  ;;  %v401_v26 = vadd.f32 %v400_v24, %v800_v45  ;;  %v344_v28 = vpop.f32.mrf.mxu1 }
  0xd8   :  { %v316_v27 = vadd.f32 %v315_v25, %v792_v37  ;;  %v345_v29 = vadd.f32 %v344_v28, %v794_v38 }
  0xd9   :  { %v419_v30 = vpack.c.bf16 %v401_v26, %v372_v23 }
  0xda   :  { %v420_v31 = vpack.c.bf16 %v345_v29, %v316_v27 }
  0xdb   :  { %435 = vst [vmem:[#allocation8 + $0x48] sm:$0xff] %v419_v30 }
  0xdc   :  { %436 = vst [vmem:[#allocation8 + $0x50] sm:$0xff] %v420_v31 }
  0xde   :  { %v373_v32 = vpop.f32.mrf.mxu2  ;;  %v402_v34 = vpop.f32.mrf.mxu3 }
  0xdf   :  { %v374_v33 = vadd.f32 %v373_v32, %v798_v44  ;;  %v318_v35 = vpop.f32.mrf.mxu0  ;;  %v403_v36 = vadd.f32 %v402_v34, %v800_v45  ;;  %v347_v40 = vpop.f32.mrf.mxu1 }
  0xe0   :  { %v319_v39 = vadd.f32 %v318_v35, %v792_v37  ;;  %v348_v41 = vadd.f32 %v347_v40, %v794_v38 }
  0xe1   :  { %v421_v42 = vpack.c.bf16 %v403_v36, %v374_v33 }
  0xe2   :  { %v422_v43 = vpack.c.bf16 %v348_v41, %v319_v39 }
  0xe3   :  { %437 = vst [vmem:[#allocation8 + $0x58] sm:$0xff] %v421_v42 }
  0xe4   :  { %438 = vst [vmem:[#allocation8 + $0x60] sm:$0xff] %v422_v43 }
  0xe6   :  { %v376_v46 = vpop.f32.mrf.mxu2  ;;  %v405_v48 = vpop.f32.mrf.mxu3 }
  0xe7   :  { %v377_v47 = vadd.f32 %v376_v46, %v798_v44  ;;  %v320_v49 = vpop.f32.mrf.mxu0  ;;  %v406_v50 = vadd.f32 %v405_v48, %v800_v45  ;;  %v349_v52 = vpop.f32.mrf.mxu1 }
  0xe8   :  { %v321_v51 = vadd.f32 %v320_v49, %v792_v37  ;;  %v350_v53 = vadd.f32 %v349_v52, %v794_v38 }
  0xe9   :  { %v423_v54 = vpack.c.bf16 %v406_v50, %v377_v47 }
  0xea   :  { %v424_v55 = vpack.c.bf16 %v350_v53, %v321_v51 }
  0xeb   :  { %439 = vst [vmem:[#allocation8 + $0x68] sm:$0xff] %v423_v54 }
  0xec   :  { %440 = vst [vmem:[#allocation8 + $0x70] sm:$0xff] %v424_v55 }
  0xee   :  { %v378_v56 = vpop.f32.mrf.mxu2  ;;  %v407_v58 = vpop.f32.mrf.mxu3 }
  0xef   :  { %v379_v57 = vadd.f32 %v378_v56, %v798_v44  ;;  %v408_v59 = vadd.f32 %v407_v58, %v800_v45 }
  0xf1   :  { %v425_v37 = vpack.c.bf16 %v408_v59, %v379_v57 }
  0xf3   :  { %441 = vst [vmem:[#allocation8 + $0x78] sm:$0xff] %v425_v37 }
  0xf4   :  { %454 = dma.vmem_to_hbm [thread:$0]  %s447_s29, 2048, %s449_s5, [#allocation4], %s753_s20, %s753_s20, %s754_s21  }
  0xf5   :  { %750 = dma.done.wait [#allocation4], 2048  }
  0xf6   :  { %751 = vsyncadd [#allocation4], 4294965248 }
  0xf7   :  { %459 = vsyncpa [#allocation3], 1 }
  0xf8   :  { %460 = vsyncpa [#allocation6], 1 }
  0xf9   :  { %461 = vsyncpa [#allocation4], 1 }

</bundles_post_ra>
